<compile_context>
chip_gen: v7x
topology: tpu7x:2x2x1
jax: 0.10.0
libtpu: 0.0.40
codegen_flags: <defaults>
</compile_context>

<pallas_src>
import functools

import jax
import jax.numpy as jnp
import numpy as np
from jax.experimental import pallas as pl
from jax.experimental.pallas import tpu as pltpu

LANES = 128
MAX_TILE_ROWS = 4096          # 4096 * 128 * 4B = 2 MiB per f32 input block


def _round_up(n, m):
    return ((n + m - 1) // m) * m


def _sublane_multiple(dtype):
    # Sublane tiling requirement per dtype: f32 -> 8, bf16 -> 16, int8/bool -> 32.
    return max(8, 32 // max(1, jnp.dtype(dtype).itemsize))


def _dice_partial_kernel(x_ref, t_ref, o_ref, *, total_rows, tile_rows, needs_mask):
    """Accumulate [sum(sig(x)*t), sum(sig(x)+t)] into a tiny resident block.

    x_ref: (tile_rows, 128) logits tile   (native dtype, cast in-kernel)
    t_ref: (tile_rows, 128) targets tile  (native dtype, cast in-kernel)
    o_ref: (2, 8, 128) f32 accumulator (constant index_map -> resident, written
           back to HBM once after the last grid step)
    """
    step = pl.program_id(0)

    @pl.when(step == 0)
    def _init():
        o_ref[...] = jnp.zeros_like(o_ref)

    x = x_ref[...].astype(jnp.float32)
    t = t_ref[...].astype(jnp.float32)

    # sigmoid(x) == 0.5 * tanh(0.5 * x) + 0.5  -> one EUP op per vreg.
    s = 0.5 * jnp.tanh(0.5 * x) + 0.5

    if needs_mask:
        # Last tile extends past the array: mask garbage rows (robust to NaN/Inf).
        row = jax.lax.broadcasted_iota(jnp.int32, x.shape, 0) + step * tile_rows
        valid = row < total_rows
        s = jnp.where(valid, s, 0.0)
        t = jnp.where(valid, t, 0.0)

    # vreg-aligned partial reduction: (tile_rows,128) -> (tile_rows//8,8,128),
    # sum over the leading (tile) axis — pure VPU adds, no cross-lane work.
    inter = (s * t).reshape(-1, 8, LANES).sum(axis=0)
    denom = (s + t).reshape(-1, 8, LANES).sum(axis=0)
    o_ref[0, :, :] += inter
    o_ref[1, :, :] += denom


@jax.jit
def dice_loss(inputs, targets, smooth=1.0):
    """DiceLoss.forward: 1 - (2*I + s) / (sum(sigmoid(x)) + sum(t) + s)."""
    xf = inputs.reshape(-1)
    tf = targets.reshape(-1)
    n = xf.shape[0]

    n_main = (n // LANES) * LANES        # 128-aligned prefix handled by the kernel
    rows = n_main // LANES

    intersection = jnp.float32(0.0)
    denom = jnp.float32(0.0)

    if rows > 0:
        sub = max(_sublane_multiple(xf.dtype), _sublane_multiple(tf.dtype))
        tile_rows = min(MAX_TILE_ROWS, _round_up(rows, sub))
        steps = -(-rows // tile_rows)
        needs_mask = (steps * tile_rows != rows)

        # Free bitcast reshapes — no pad, no dtype-cast materialization.
        x2 = xf[:n_main].reshape(rows, LANES)
        t2 = tf[:n_main].reshape(rows, LANES)

        kernel = functools.partial(
            _dice_partial_kernel,
            total_rows=rows, tile_rows=tile_rows, needs_mask=needs_mask)

        partials = pl.pallas_call(
            kernel,
            out_shape=jax.ShapeDtypeStruct((2, 8, LANES), jnp.float32),
            grid_spec=pltpu.PrefetchScalarGridSpec(
                num_scalar_prefetch=0,
                grid=(steps,),
                in_specs=[
                    pl.BlockSpec((tile_rows, LANES), lambda s: (s, 0)),
                    pl.BlockSpec((tile_rows, LANES), lambda s: (s, 0)),
                ],
                out_specs=pl.BlockSpec((2, 8, LANES), lambda s: (0, 0, 0)),
            ),
            compiler_params=pltpu.CompilerParams(
                dimension_semantics=("arbitrary",),
                vmem_limit_bytes=32 * 1024 * 1024),
        )(x2, t2)

        sums = jnp.sum(partials, axis=(1, 2))        # (2,) — 2 KiB final reduce
        intersection = sums[0]
        denom = sums[1]

    if n_main < n:
        # <128-element ragged tail: finish in plain JAX (no whole-array pad copy).
        tx = jax.nn.sigmoid(xf[n_main:].astype(jnp.float32))
        tt = tf[n_main:].astype(jnp.float32)
        intersection = intersection + jnp.sum(tx * tt)
        denom = denom + jnp.sum(tx) + jnp.sum(tt)

    dice = (2.0 * intersection + smooth) / (denom + smooth)
    return 1.0 - dice


def dice_loss_ref(inputs, targets, smooth=1.0):
    """Pure-JAX reference mirroring the PyTorch DiceLoss.forward."""
    x = jax.nn.sigmoid(inputs.astype(jnp.float32)).reshape(-1)
    t = targets.astype(jnp.float32).reshape(-1)
    intersection = jnp.sum(x * t)
    dice = (2.0 * intersection + smooth) / (jnp.sum(x) + jnp.sum(t) + smooth)
    return 1.0 - dice


if __name__ == "__main__":
    key = jax.random.PRNGKey(0)
    k1, k2 = jax.random.split(key)

    B, C, H, W = 2, 4, 16, 16
    inputs = jax.random.normal(k1, (B, C, H, W), dtype=jnp.float32)             # logits
    targets = (jax.random.uniform(k2, (B, C, H, W)) > 0.5).astype(jnp.float32)  # binary mask

    loss = jax.block_until_ready(dice_loss(inputs, targets))
    ref = jax.block_until_ready(dice_loss_ref(inputs, targets))
    np.testing.assert_allclose(np.asarray(loss), np.asarray(ref), rtol=1e-5, atol=1e-5)

    print("KERNEL_OK")
</pallas_src>

<mosaic_0001>
module attributes {stable_mosaic.version = 11 : i64} {
  func.func @_dice_partial_kernel(%arg0: i32, %arg1: memref<16x128xf32, #tpu.memory_space<vmem>>, %arg2: memref<16x128xf32, #tpu.memory_space<vmem>>, %arg3: memref<2x8x128xf32, #tpu.memory_space<vmem>>) attributes {dimension_semantics = [#tpu.dimension_semantics<arbitrary>], iteration_bounds = array<i64: 1>, scalar_prefetch = 0 : i64, scratch_operands = 0 : i64, tpu.core_type = #tpu.core_type<tc>, window_params = [{transform_indices = @transform_0, window_bounds = array<i64: 16, 128>}, {transform_indices = @transform_1, window_bounds = array<i64: 16, 128>}, {pipeline_mode = #tpu.pipeline_mode<synchronous>, transform_indices = @transform_2, window_bounds = array<i64: 2, 8, 128>}]} {
    %c0_i32 = arith.constant 0 : i32
    %0 = arith.cmpi eq, %arg0, %c0_i32 : i32
    %1 = arith.extui %0 : i1 to i32
    %c0_i32_0 = arith.constant 0 : i32
    %2 = arith.cmpi ne, %1, %c0_i32_0 : i32
    scf.if %2 {
      %cst_19 = arith.constant 0.000000e+00 : f32
      %30 = vector.broadcast %cst_19 : f32 to vector<2x8x128xf32>
      %c0_20 = arith.constant 0 : index
      %c0_21 = arith.constant 0 : index
      %c0_22 = arith.constant 0 : index
      %31 = vector.load %arg3[%c0_20, %c0_21, %c0_22] : memref<2x8x128xf32, #tpu.memory_space<vmem>>, vector<2x8x128xf32>
      tpu.vector_store %arg3[%c0_20, %c0_21, %c0_22], %30 {strides = array<i32>} : memref<2x8x128xf32, #tpu.memory_space<vmem>>, vector<2x8x128xf32>,
    } else {
    }
    %c0 = arith.constant 0 : index
    %c0_1 = arith.constant 0 : index
    %3 = vector.load %arg1[%c0, %c0_1] : memref<16x128xf32, #tpu.memory_space<vmem>>, vector<16x128xf32>
    %c0_2 = arith.constant 0 : index
    %c0_3 = arith.constant 0 : index
    %4 = vector.load %arg2[%c0_2, %c0_3] : memref<16x128xf32, #tpu.memory_space<vmem>>, vector<16x128xf32>
    %cst = arith.constant 5.000000e-01 : f32
    %5 = vector.broadcast %cst : f32 to vector<16x128xf32>
    %6 = arith.mulf %5, %3 : vector<16x128xf32>
    %7 = math.tanh %6 : vector<16x128xf32>
    %cst_4 = arith.constant 5.000000e-01 : f32
    %8 = vector.broadcast %cst_4 : f32 to vector<16x128xf32>
    %9 = arith.mulf %8, %7 : vector<16x128xf32>
    %cst_5 = arith.constant 5.000000e-01 : f32
    %10 = vector.broadcast %cst_5 : f32 to vector<16x128xf32>
    %11 = arith.addf %9, %10 : vector<16x128xf32>
    %12 = arith.mulf %11, %4 : vector<16x128xf32>
    %13 = vector.shape_cast %12 : vector<16x128xf32> to vector<2x8x128xf32>
    %cst_6 = arith.constant dense<0.000000e+00> : vector<8x128xf32>
    %14 = vector.multi_reduction <add>, %13, %cst_6 [0] : vector<2x8x128xf32> to vector<8x128xf32>
    %15 = arith.addf %11, %4 : vector<16x128xf32>
    %16 = vector.shape_cast %15 : vector<16x128xf32> to vector<2x8x128xf32>
    %cst_7 = arith.constant dense<0.000000e+00> : vector<8x128xf32>
    %17 = vector.multi_reduction <add>, %16, %cst_7 [0] : vector<2x8x128xf32> to vector<8x128xf32>
    %c0_8 = arith.constant 0 : index
    %c0_9 = arith.constant 0 : index
    %c0_10 = arith.constant 0 : index
    %18 = vector.load %arg3[%c0_8, %c0_9, %c0_10] : memref<2x8x128xf32, #tpu.memory_space<vmem>>, vector<1x8x128xf32>
    %19 = vector.shape_cast %18 : vector<1x8x128xf32> to vector<8x128xf32>
    %20 = arith.addf %19, %14 : vector<8x128xf32>
    %c0_11 = arith.constant 0 : index
    %c0_12 = arith.constant 0 : index
    %c0_13 = arith.constant 0 : index
    %21 = vector.load %arg3[%c0_11, %c0_12, %c0_13] : memref<2x8x128xf32, #tpu.memory_space<vmem>>, vector<1x8x128xf32>
    %22 = vector.shape_cast %21 : vector<1x8x128xf32> to vector<8x128xf32>
    %23 = vector.shape_cast %20 : vector<8x128xf32> to vector<1x8x128xf32>
    tpu.vector_store %arg3[%c0_11, %c0_12, %c0_13], %23 {strides = array<i32>} : memref<2x8x128xf32, #tpu.memory_space<vmem>>, vector<1x8x128xf32>,
    %c1 = arith.constant 1 : index
    %c0_14 = arith.constant 0 : index
    %c0_15 = arith.constant 0 : index
    %24 = vector.load %arg3[%c1, %c0_14, %c0_15] : memref<2x8x128xf32, #tpu.memory_space<vmem>>, vector<1x8x128xf32>
    %25 = vector.shape_cast %24 : vector<1x8x128xf32> to vector<8x128xf32>
    %26 = arith.addf %25, %17 : vector<8x128xf32>
    %c1_16 = arith.constant 1 : index
    %c0_17 = arith.constant 0 : index
    %c0_18 = arith.constant 0 : index
    %27 = vector.load %arg3[%c1_16, %c0_17, %c0_18] : memref<2x8x128xf32, #tpu.memory_space<vmem>>, vector<1x8x128xf32>
    %28 = vector.shape_cast %27 : vector<1x8x128xf32> to vector<8x128xf32>
    %29 = vector.shape_cast %26 : vector<8x128xf32> to vector<1x8x128xf32>
    tpu.vector_store %arg3[%c1_16, %c0_17, %c0_18], %29 {strides = array<i32>} : memref<2x8x128xf32, #tpu.memory_space<vmem>>, vector<1x8x128xf32>,
    return
  }
  func.func @transform_0(%arg0: i32) -> (i32, i32) {
    %c0_i32 = arith.constant 0 : i32
    %c0_i32_0 = arith.constant 0 : i32
    return %arg0, %c0_i32 : i32, i32
  }
  func.func @transform_1(%arg0: i32) -> (i32, i32) {
    %c0_i32 = arith.constant 0 : i32
    %c0_i32_0 = arith.constant 0 : i32
    return %arg0, %c0_i32 : i32, i32
  }
  func.func @transform_2(%arg0: i32) -> (i32, i32, i32) {
    %c0_i32 = arith.constant 0 : i32
    %c0_i32_0 = arith.constant 0 : i32
    %c0_i32_1 = arith.constant 0 : i32
    %c0_i32_2 = arith.constant 0 : i32
    return %c0_i32, %c0_i32_0, %c0_i32_1 : i32, i32, i32
  }
}

</mosaic_0001>

<bundles_post_ra>
// kernel: dice_loss.1
= control target key start
LH: loop header
LB: loop body
LE: loop exit
PB: predicated region body
PF: predicated region fallthrough
CT: control target
= control target key end

     0   :  { %s86_s0 = inlined_call_operand.vmem [shape: f32[16,128], index: 0, kind: input, shape index: {}]   ;;  %s87_s1 = inlined_call_operand.vmem [shape: f32[16,128], index: 1, kind: input, shape index: {}]   ;;  %s88_s2 = inlined_call_operand.vmem [shape: f32[2,8,128], index: 2, kind: output, shape index: {}]  }
   0x1   :  { %v17_v0 = vld [vmem:[%s86_s0] sm:$0xff]  ;;  %v18_v1 = vld [vmem:[%s86_s0 + $0x8] sm:$0xff] }
   0x2   :  { %v21_v2 = vmul.f32 0.5, %v17_v0  ;;  %v22_v3 = vmul.f32 0.5, %v18_v1  ;;  %v19_v7 = vld [vmem:[%s87_s1] sm:$0xff]  ;;  %v20_v9 = vld [vmem:[%s87_s1 + $0x8] sm:$0xff] }
   0x4   :  { %49 = vtanh.f32 %v21_v2 }
   0x5   :  { %51 = vtanh.f32 %v22_v3 }
   0xe   :  { %v50_v4 = vpop.eup %49 }
   0xf   :  { %v52_v5 = vpop.eup %51  ;;  %v25_v6 = vmul.f32 0.5, %v50_v4 }
  0x10   :  { %v26_v8 = vmul.f32 0.5, %v52_v5 }
  0x11   :  { %v27_v10 = vadd.f32 0.5, %v25_v6 }
  0x12   :  { %v28_v11 = vadd.f32 0.5, %v26_v8 }
  0x13   :  { %v29_v12 = vmul.f32 %v27_v10, %v19_v7  ;;  %v32_v13 = vadd.f32 %v27_v10, %v19_v7 }
  0x14   :  { %v30_v14 = vmul.f32 %v28_v11, %v20_v9  ;;  %v33_v15 = vadd.f32 %v28_v11, %v20_v9 }
  0x16   :  { %v31_v16 = vadd.f32 %v30_v14, %v29_v12  ;;  %v34_v17 = vadd.f32 %v33_v15, %v32_v13 }
  0x18   :  { %37 = vst [vmem:[%s88_s2] sm:$0xff] %v31_v16  ;;  %47 = vst [vmem:[%s88_s2 + $0x8] sm:$0xff] %v34_v17 }

</bundles_post_ra>
